<compile_context>
chip_gen: v6e
topology: v6e:2x2x1
jax: 0.10.0
libtpu: 0.0.40
codegen_flags: <defaults>
</compile_context>

<pallas_src>
import jax
import jax.numpy as jnp
from jax import lax
from jax.experimental import pallas as pl
from jax.experimental.pallas import tpu as pltpu


def _round_up(v, m):
    return ((v + m - 1) // m) * m


def _make_kernel(n_valid, n_pad, key_block):
    """Grid = (batch_blocks, depth). Batch axis parallel, depth a sequential carry.

    NOTE: the carry in out_ref relies on depth being the INNERMOST grid axis; do not
    reorder the grid.
    """

    def kernel(x_ref, w_ref, o_ref):
        d = pl.program_id(1)

        # First layer of this batch block: seed the resident output block with the input.
        # (out_ref doubles as the f32 residual carry because the I/O dtype is f32; a
        #  sub-f32 output dtype would want an f32 VMEM scratch carry instead.)
        @pl.when(d == 0)
        def _():
            o_ref[...] = x_ref[...]

        x = o_ref[...].astype(jnp.float32)          # (bb, Np, Dp) residual carry, f32
        w = w_ref[0]                                # (Dp, 3*Dp) bf16, [Wk | Wq*scale | Wv]
        bb, _, dp = x.shape

        # Fused K/Q/V projection: one wide, lane-dense bf16 MXU matmul, f32 accumulation.
        # Reshape while still f32 (Np is a multiple of 8 -> free layout merge), then cast.
        x2 = x.reshape(bb * n_pad, dp).astype(jnp.bfloat16)
        kqv = jnp.dot(x2, w, preferred_element_type=jnp.float32)   # (bb*Np, 3*Dp) f32
        kqv = kqv.reshape(bb, n_pad, 3 * dp)
        k = kqv[:, :, 0:dp].astype(jnp.bfloat16)
        q = kqv[:, :, dp:2 * dp].astype(jnp.bfloat16)   # N**-0.5 already folded into Wq
        v = kqv[:, :, 2 * dp:3 * dp].astype(jnp.bfloat16)

        acc = x                                     # residual connection, f32
        n_blocks = -(-n_pad // key_block)
        for blk in range(n_blocks):                 # static key-axis tiling of the scores
            lo = blk * key_block
            hi = min(lo + key_block, n_pad)
            k_blk = k[:, lo:hi, :]
            v_blk = v[:, lo:hi, :]

            # scores[b, i, j] = <query_i, key_j> * N**-0.5   (scale folded into q)
            s = jnp.einsum("bnd,bmd->bnm", q, k_blk,
                           preferred_element_type=jnp.float32)     # (bb, Np, Tk) f32

            # PyTorch nn.Softmax(dim=1): normalize over the QUERY axis. Padded query rows
            # must not contribute to any key column's denominator -> mask them to -inf.
            if n_valid < n_pad:
                qrow = lax.broadcasted_iota(jnp.int32, s.shape, 1)
                s = jnp.where(qrow < n_valid, s, -jnp.inf)

            m = jnp.max(s, axis=1, keepdims=True)
            e = jnp.exp(s - m)
            den = jnp.sum(e, axis=1, keepdims=True)
            attn = (e * pl.reciprocal(den, approx=True)).astype(jnp.bfloat16)

            acc = acc + jnp.einsum("bnm,bmd->bnd", attn, v_blk,
                                   preferred_element_type=jnp.float32)

        o_ref[...] = acc.astype(o_ref.dtype)

    return kernel


def _tpu_topology():
    """(TensorCores visible to one Pallas grid, physical VMEM bytes) — heuristic, safe default."""
    try:
        kind = jax.devices()[0].device_kind.lower()
    except Exception:
        kind = ""
    two_core = ("v7" in kind) or ("v4" in kind) or ("v5p" in kind)
    vmem = (64 << 20) if ("v7" in kind or kind == "") else (128 << 20)
    return (2 if two_core else 1), vmem


def _pick_batch_block(batch, n_pad, d_pad, key_block, cores, vmem_budget):
    """Largest batch block that fits the VMEM budget while keeping >= `cores` parallel blocks."""

    def footprint(bb):
        f32, bf16 = 4, 2
        tk = min(key_block, n_pad)
        b = 2 * bb * n_pad * d_pad * f32            # x input double buffer
        b += 2 * bb * n_pad * d_pad * f32           # resident output block (+ writeback buffer)
        b += 2 * d_pad * 3 * d_pad * bf16           # fused bf16 weight double buffer
        b += bb * n_pad * 3 * d_pad * (f32 + bf16)  # kqv (f32) + q/k/v (bf16)
        b += 2 * bb * n_pad * tk * f32              # scores / exp key-block
        b += 2 * bb * n_pad * d_pad * f32           # residual carry + accumulator
        return b

    best = 1
    for bb in range(1, batch + 1):
        if batch % bb:
            continue
        if (batch // bb) >= cores and footprint(bb) <= vmem_budget:
            best = bb
    return best, footprint(best)


@jax.jit
def simple_transformer(x, wk, wq, wv):
    """x: (B, N, D); wk/wq/wv: (depth, D, D) raw nn.Linear weights (untransposed, no bias)."""
    B, N, D = x.shape
    depth = wk.shape[0]

    # PyTorch: scale = x.size(1) ** -0.5  (sequence length, NOT d_k). Fold it into Wq.
    scale = float(N) ** -0.5

    # Lane/sublane-dense padding: D -> multiple of 128 (lanes), N -> multiple of 16
    # (sublane packing of the bf16 q/k/v operands). Zero D-padding is transparent;
    # padded query rows are masked to -inf inside the kernel.
    Dp = _round_up(D, 128)
    Np = _round_up(N, 16)
    dpad, npad = Dp - D, Np - N

    x_p = jnp.pad(x, ((0, 0), (0, npad), (0, dpad))) if (dpad or npad) else x
    if dpad:
        wk = jnp.pad(wk, ((0, 0), (0, dpad), (0, dpad)))
        wq = jnp.pad(wq, ((0, 0), (0, dpad), (0, dpad)))
        wv = jnp.pad(wv, ((0, 0), (0, dpad), (0, dpad)))
    # Fused, pre-scaled, bf16 weight stack: (depth, Dp, 3*Dp) -> one weight DMA + one wide
    # MXU matmul per layer, half the HBM bytes of the f32 version.
    w_kqv = jnp.concatenate([wk, wq * scale, wv], axis=-1).astype(jnp.bfloat16)

    # Key-axis tile for the (N, N) scores (softmax over the query axis -> each key block
    # normalizes independently; no online rescale needed).
    key_block = Np if Np <= 512 else 512

    cores, phys_vmem = _tpu_topology()
    vmem_budget = phys_vmem // 2
    bb, est = _pick_batch_block(B, Np, Dp, key_block, cores, vmem_budget)
    nb = B // bb
    # TODO(synk): when B < number of TensorCores (e.g. B==1 on v7x), shard the key axis
    # across cores instead so the second core does not idle.

    out_p = pl.pallas_call(
        _make_kernel(N, Np, key_block),
        out_shape=jax.ShapeDtypeStruct((B, Np, Dp), x.dtype),
        grid_spec=pltpu.PrefetchScalarGridSpec(
            num_scalar_prefetch=0,
            grid=(nb, depth),                      # depth MUST stay innermost (carry in out_ref)
            in_specs=[
                pl.BlockSpec((bb, Np, Dp), lambda b, d: (b, 0, 0)),
                pl.BlockSpec((1, Dp, 3 * Dp), lambda b, d: (d, 0, 0)),
            ],
            out_specs=pl.BlockSpec((bb, Np, Dp), lambda b, d: (b, 0, 0)),
        ),
        compiler_params=pltpu.CompilerParams(
            dimension_semantics=("parallel", "arbitrary"),
            vmem_limit_bytes=int(min(vmem_budget, max(32 << 20, 2 * est))),
        ),
    )(x_p, w_kqv)

    return out_p[:, :N, :D] if (dpad or npad) else out_p


def _reference(x, wk, wq, wv):
    """Pure-JAX reference mirroring the PyTorch module (f32 throughout)."""
    x = x.astype(jnp.float32)
    depth = wk.shape[0]
    scale = float(x.shape[1]) ** -0.5          # x.size(1) ** -0.5
    for l in range(depth):
        k = x @ wk[l]
        q = x @ wq[l]
        v = x @ wv[l]
        s = jnp.einsum("bnd,bmd->bnm", q, k) * scale
        a = jax.nn.softmax(s, axis=1)          # softmax over the query axis (dim=1)
        x = jnp.einsum("bnm,bmd->bnd", a, v) + x
    return x


if __name__ == "__main__":
    # Small, deterministic problem: batch=2, seq=8, dim=32, depth=2.
    B, N, D, DEPTH = 2, 8, 32, 2

    root = jax.random.PRNGKey(0)
    kx, kk, kq, kv = jax.random.split(root, 4)

    x = jax.random.normal(kx, (B, N, D), dtype=jnp.float32)
    bound = 1.0 / (D ** 0.5)  # mimic nn.Linear default weight init range
    wk = jax.random.uniform(kk, (DEPTH, D, D), jnp.float32, -bound, bound)
    wq = jax.random.uniform(kq, (DEPTH, D, D), jnp.float32, -bound, bound)
    wv = jax.random.uniform(kv, (DEPTH, D, D), jnp.float32, -bound, bound)

    out = simple_transformer(x, wk, wq, wv)
    out = jax.block_until_ready(out)

    ref = _reference(x, wk, wq, wv)
    assert out.shape == (B, N, D)
    # Tolerance covers the bf16 MXU operands (f32 accumulation) and the EUP approximate
    # reciprocal in the softmax denominator, vs the pure-f32 reference.
    assert jnp.allclose(out, ref, rtol=3e-2, atol=3e-2), "mismatch vs reference"

    print("KERNEL_OK")
</pallas_src>

<mosaic_0001>
module attributes {stable_mosaic.version = 11 : i64} {
  func.func @kernel(%arg0: i32, %arg1: i32, %arg2: memref<2x16x128xf32, #tpu.memory_space<vmem>>, %arg3: memref<1x128x384xbf16, #tpu.memory_space<vmem>>, %arg4: memref<2x16x128xf32, #tpu.memory_space<vmem>>) attributes {dimension_semantics = [#tpu.dimension_semantics<parallel>, #tpu.dimension_semantics<arbitrary>], iteration_bounds = array<i64: 1, 2>, scalar_prefetch = 0 : i64, scratch_operands = 0 : i64, tpu.core_type = #tpu.core_type<tc>, window_params = [{transform_indices = @transform_0, window_bounds = array<i64: 2, 16, 128>}, {transform_indices = @transform_1, window_bounds = array<i64: 1, 128, 384>}, {transform_indices = @transform_2, window_bounds = array<i64: 2, 16, 128>}]} {
    %c0_i32 = arith.constant 0 : i32
    %0 = arith.cmpi eq, %arg1, %c0_i32 : i32
    %1 = arith.extui %0 : i1 to i32
    %c0_i32_0 = arith.constant 0 : i32
    %2 = arith.cmpi ne, %1, %c0_i32_0 : i32
    scf.if %2 {
      %c0_14 = arith.constant 0 : index
      %c0_15 = arith.constant 0 : index
      %c0_16 = arith.constant 0 : index
      %36 = vector.load %arg2[%c0_14, %c0_15, %c0_16] : memref<2x16x128xf32, #tpu.memory_space<vmem>>, vector<2x16x128xf32>
      %c0_17 = arith.constant 0 : index
      %c0_18 = arith.constant 0 : index
      %c0_19 = arith.constant 0 : index
      %37 = vector.load %arg4[%c0_17, %c0_18, %c0_19] : memref<2x16x128xf32, #tpu.memory_space<vmem>>, vector<2x16x128xf32>
      tpu.vector_store %arg4[%c0_17, %c0_18, %c0_19], %36 {strides = array<i32>} : memref<2x16x128xf32, #tpu.memory_space<vmem>>, vector<2x16x128xf32>,
    } else {
    }
    %c0 = arith.constant 0 : index
    %c0_1 = arith.constant 0 : index
    %c0_2 = arith.constant 0 : index
    %3 = vector.load %arg4[%c0, %c0_1, %c0_2] : memref<2x16x128xf32, #tpu.memory_space<vmem>>, vector<2x16x128xf32>
    %c0_3 = arith.constant 0 : index
    %c0_4 = arith.constant 0 : index
    %c0_5 = arith.constant 0 : index
    %4 = vector.load %arg3[%c0_3, %c0_4, %c0_5] : memref<1x128x384xbf16, #tpu.memory_space<vmem>>, vector<1x128x384xbf16>
    %5 = vector.shape_cast %4 : vector<1x128x384xbf16> to vector<128x384xbf16>
    %6 = vector.shape_cast %3 : vector<2x16x128xf32> to vector<32x128xf32>
    %7 = arith.truncf %6 : vector<32x128xf32> to vector<32x128xbf16>
    %cst = arith.constant dense<0.000000e+00> : vector<32x384xf32>
    %8 = tpu.matmul %7, %5, %cst {dimension_numbers = #tpu.dot_dimension_numbers<[1], [0], [0], [1], [0, 0, 1, 1], [], []>} : vector<32x128xbf16>, vector<128x384xbf16>, vector<32x384xf32> -> vector<32x384xf32>
    %9 = vector.shape_cast %8 : vector<32x384xf32> to vector<2x16x384xf32>
    %10 = vector.extract_strided_slice %9 {offsets = [0, 0, 0], sizes = [2, 16, 128], strides = [1, 1, 1]} : vector<2x16x384xf32> to vector<2x16x128xf32>
    %11 = arith.truncf %10 : vector<2x16x128xf32> to vector<2x16x128xbf16>
    %12 = vector.extract_strided_slice %9 {offsets = [0, 0, 128], sizes = [2, 16, 128], strides = [1, 1, 1]} : vector<2x16x384xf32> to vector<2x16x128xf32>
    %13 = arith.truncf %12 : vector<2x16x128xf32> to vector<2x16x128xbf16>
    %14 = vector.extract_strided_slice %9 {offsets = [0, 0, 256], sizes = [2, 16, 128], strides = [1, 1, 1]} : vector<2x16x384xf32> to vector<2x16x128xf32>
    %15 = arith.truncf %14 : vector<2x16x128xf32> to vector<2x16x128xbf16>
    "tpu.trace_start"() <{level = 10 : i32, message = "bnd,bmd->bnm"}> : () -> ()
    %cst_6 = arith.constant dense<0.000000e+00> : vector<2x16x16xf32>
    %16 = tpu.matmul %13, %11, %cst_6 {dimension_numbers = #tpu.dot_dimension_numbers<[2], [2], [1], [1], [0, 0, 0, 1, 1, 1], [0], [0]>} : vector<2x16x128xbf16>, vector<2x16x128xbf16>, vector<2x16x16xf32> -> vector<2x16x16xf32>
    "tpu.trace_stop"() : () -> ()
    %17 = tpu.iota {dimensions = array<i32: 1>} : vector<2x16x16xi32>
    %c8_i32 = arith.constant 8 : i32
    %18 = vector.broadcast %c8_i32 : i32 to vector<2x16x16xi32>
    %19 = arith.cmpi slt, %17, %18 : vector<2x16x16xi32>
    %cst_7 = arith.constant 0xFF800000 : f32
    %20 = vector.broadcast %cst_7 : f32 to vector<2x16x16xf32>
    %21 = arith.select %19, %16, %20 : vector<2x16x16xi1>, vector<2x16x16xf32>
    %cst_8 = arith.constant dense<0xFF800000> : vector<2x16xf32>
    %22 = vector.multi_reduction <maximumf>, %21, %cst_8 [1] : vector<2x16x16xf32> to vector<2x16xf32>
    %23 = vector.shape_cast %22 : vector<2x16xf32> to vector<2x1x16xf32>
    %24 = vector.broadcast %23 : vector<2x1x16xf32> to vector<2x16x16xf32>
    %25 = arith.subf %21, %24 : vector<2x16x16xf32>
    %26 = math.exp %25 : vector<2x16x16xf32>
    %cst_9 = arith.constant dense<0.000000e+00> : vector<2x16xf32>
    %27 = vector.multi_reduction <add>, %26, %cst_9 [1] : vector<2x16x16xf32> to vector<2x16xf32>
    %28 = vector.shape_cast %27 : vector<2x16xf32> to vector<2x1x16xf32>
    %29 = tpu.reciprocal %28 {approx = true} : vector<2x1x16xf32> -> vector<2x1x16xf32>
    %30 = vector.broadcast %29 : vector<2x1x16xf32> to vector<2x16x16xf32>
    %31 = arith.mulf %26, %30 : vector<2x16x16xf32>
    %32 = arith.truncf %31 : vector<2x16x16xf32> to vector<2x16x16xbf16>
    "tpu.trace_start"() <{level = 10 : i32, message = "bnm,bmd->bnd"}> : () -> ()
    %cst_10 = arith.constant dense<0.000000e+00> : vector<2x16x128xf32>
    %33 = tpu.matmul %32, %15, %cst_10 {dimension_numbers = #tpu.dot_dimension_numbers<[2], [1], [1], [2], [0, 0, 0, 1, 1, 2], [0], [0]>} : vector<2x16x16xbf16>, vector<2x16x128xbf16>, vector<2x16x128xf32> -> vector<2x16x128xf32>
    "tpu.trace_stop"() : () -> ()
    %34 = arith.addf %3, %33 : vector<2x16x128xf32>
    %c0_11 = arith.constant 0 : index
    %c0_12 = arith.constant 0 : index
    %c0_13 = arith.constant 0 : index
    %35 = vector.load %arg4[%c0_11, %c0_12, %c0_13] : memref<2x16x128xf32, #tpu.memory_space<vmem>>, vector<2x16x128xf32>
    tpu.vector_store %arg4[%c0_11, %c0_12, %c0_13], %34 {strides = array<i32>} : memref<2x16x128xf32, #tpu.memory_space<vmem>>, vector<2x16x128xf32>,
    return
  }
  func.func @transform_0(%arg0: i32, %arg1: i32) -> (i32, i32, i32) {
    %c0_i32 = arith.constant 0 : i32
    %c0_i32_0 = arith.constant 0 : i32
    %c0_i32_1 = arith.constant 0 : i32
    return %arg0, %c0_i32, %c0_i32_0 : i32, i32, i32
  }
  func.func @transform_1(%arg0: i32, %arg1: i32) -> (i32, i32, i32) {
    %c0_i32 = arith.constant 0 : i32
    %c0_i32_0 = arith.constant 0 : i32
    %c0_i32_1 = arith.constant 0 : i32
    return %arg1, %c0_i32, %c0_i32_0 : i32, i32, i32
  }
  func.func @transform_2(%arg0: i32, %arg1: i32) -> (i32, i32, i32) {
    %c0_i32 = arith.constant 0 : i32
    %c0_i32_0 = arith.constant 0 : i32
    %c0_i32_1 = arith.constant 0 : i32
    return %arg0, %c0_i32, %c0_i32_0 : i32, i32, i32
  }
}

</mosaic_0001>

<bundles_post_ra>
// kernel: simple_transformer.1
= control target key start
LH: loop header
LB: loop body
LE: loop exit
PB: predicated region body
PF: predicated region fallthrough
CT: control target
= control target key end

     0   :  { %s1007_s9 = smov 0   ;;  %s1009_s10 = smov 0   ;;  %s1139_s0 = inlined_call_operand.vmem [shape: f32[2,16,128], index: 0, kind: input, shape index: {}]   ;;  %s1140_s1 = inlined_call_operand.vmem [shape: bf16[2,128,384], index: 1, kind: input, shape index: {}]   ;;  %s1141_s2 = inlined_call_operand.vmem [shape: f32[2,16,128], index: 2, kind: output, shape index: {}]  }
   0x1   :  { %s1011_s11 = smov 0  }
   0x2 LB: > { %s21_s12 = sadd.s32 1, %s983_s10  ;;  %p798_p0 = scmp.ge.s32.totalorder %s987_s11, 1  ;;  %s987_s11 = sphi %s1011_s11, %s12_s11   ;;  %s983_s10 = sphi %s1009_s10, %s1143_s10   ;;  %s979_s9 = sphi %s1007_s9, %s1142_s9  }
   0x3   : > { %p22_p1 = scmp.ge.s32.totalorder %s21_s12, 2  ;;  %p136_p2 = scmp.lt.s32.totalorder %s987_s11, 3 }
   0x5   : > { %s1145_s12 = smov (%p22_p1, %s21_s12), 0  ;;  %p137_p3 = pnand %p798_p0, %p136_p2 }
   0x6   : > { %p172_p4 = scmp.lt.s32.totalorder (!%p137_p3), %s979_s9, 1  ;;  %p800_p5 = scmp.ne.s32.totalorder (!%p137_p3), %s979_s9, 0 }
   0x7   : > { %140 = sbr.rel (%p137_p3) target bundleno = 726 (0x2d6), region = 28 }
   0xc   : > { %s173_s13 = scalar_select %p172_p4, %s979_s9, 1 }
   0xd   : > { %188 = sbr.rel (%p800_p5) target bundleno = 21 (0x15), region = 32 }
   0xe   : > { %s893_s14 = smul.u32 192, %s173_s13 }
  0x10   : > { %s1028_s17 = scalar_lea.vmem %s1140_s1, %s893_s14 }
  0x12   : > { %v189_v0 = vld [vmem:[%s1139_s0] sm:$0xff]  ;;  %v190_v1 = vld [vmem:[%s1139_s0 + $0x8] sm:$0xff]  ;;  %v191_v2 = vld [vmem:[%s1139_s0 + $0x10] sm:$0xff] }
  0x13   : > { %193 = vst [vmem:[%s1141_s2] sm:$0xff] %v189_v0  ;;  %194 = vst [vmem:[%s1141_s2 + $0x8] sm:$0xff] %v190_v1  ;;  %v192_v3 = vld [vmem:[%s1139_s0 + $0x18] sm:$0xff] }
  0x14   : > { %195 = vst [vmem:[%s1141_s2 + $0x10] sm:$0xff] %v191_v2  ;;  %196 = vst [vmem:[%s1141_s2 + $0x18] sm:$0xff] %v192_v3 }
  0x15 PF: > { %v921_v4 = vld [vmem:[%s1028_s17 + $0xac] ss:$12 sps:$4 sm:$0xff]   ;;  %v923_v5 = vld [vmem:[%s1028_s17 + $0xa8] ss:$12 sps:$4 sm:$0xff]   ;;  %v989_v6 = vmov 0   ;;  %v990_v35 = vmov 0.0  }
  0x16   : > { %395 = vmatprep.mubr.bf16.mxu0 %v989_v6  ;;  %363 = vmatprep.subr.bf16.mxu0 %v921_v4  ;;  %v924_v7 = vld [vmem:[%s1028_s17 + $0x94] ss:$12 sps:$4 sm:$0xff]   ;;  %v926_v8 = vld [vmem:[%s1028_s17 + $0x90] ss:$12 sps:$4 sm:$0xff]   ;;  %v929_v10 = vld [vmem:[%s1028_s17 + $0x78] ss:$12 sps:$4 sm:$0xff]  }
  0x17   : > { %364 = vmatpush1.bf16.msra.mxu0 %v923_v5  ;;  %v927_v9 = vld [vmem:[%s1028_s17 + $0x7c] ss:$12 sps:$4 sm:$0xff]   ;;  %v930_v11 = vld [vmem:[%s1028_s17 + $0x64] ss:$12 sps:$4 sm:$0xff]   ;;  %v932_v13 = vld [vmem:[%s1028_s17 + $0x60] ss:$12 sps:$4 sm:$0xff]  }
  0x18   : > { %365 = vmatprep.subr.bf16.mxu0 %v924_v7  ;;  %v933_v14 = vld [vmem:[%s1028_s17 + $0x4c] ss:$12 sps:$4 sm:$0xff]   ;;  %v945_v17 = vld [vmem:[%s1028_s17 + $0xb0] ss:$12 sps:$4 sm:$0xff]   ;;  %v935_v19 = vld [vmem:[%s1028_s17 + $0x48] ss:$12 sps:$4 sm:$0xff]  }
  0x19   : > { %v946_v18 = vld [vmem:[%s1028_s17 + $0x98] ss:$12 sps:$4 sm:$0xff]   ;;  %849 = vmatprep.subr.bf16.mxu1 %v945_v17  ;;  %v936_v20 = vld [vmem:[%s1028_s17 + $0x34] ss:$12 sps:$4 sm:$0xff]   ;;  %v938_v22 = vld [vmem:[%s1028_s17 + $0x30] ss:$12 sps:$4 sm:$0xff]  }
  0x1a   : > { %v1064_v12 = vld [vmem:[%s1141_s2] sm:$0xff]  ;;  %v1071_v15 = vld [vmem:[%s1141_s2 + $0x8] sm:$0xff]  ;;  %850 = vmatpush3.bf16.msra.mxu1 %v945_v17  ;;  %v949_v27 = vld [vmem:[%s1028_s17 + $0x50] ss:$12 sps:$4 sm:$0xff]   ;;  %vm991_vm0 = vmmov 0   ;;  %vm562_vm1 = vcmask 130048  }
  0x1b   : > { %366 = vmatpush1.bf16.msra.mxu0 %v926_v8  ;;  %v233_v16 = vpack.c.bf16 %v1071_v15, %v1064_v12  ;;  %851 = vmatprep.subr.bf16.mxu1 %v946_v18  ;;  %v947_v21 = vld [vmem:[%s1028_s17 + $0x80] ss:$12 sps:$4 sm:$0xff]   ;;  %v939_v23 = vld [vmem:[%s1028_s17 + $0x1c] ss:$12 sps:$4 sm:$0xff]   ;;  %v941_v25 = vld [vmem:[%s1028_s17 + $0x18] ss:$12 sps:$4 sm:$0xff]  }
  0x1c   : > { %367 = vmatprep.subr.bf16.mxu0 %v927_v9  ;;  %v948_v24 = vld [vmem:[%s1028_s17 + $0x68] ss:$12 sps:$4 sm:$0xff]   ;;  %v942_v26 = vld [vmem:[%s1028_s17 + $0x4] ss:$12 sps:$4 sm:$0xff]   ;;  %v944_v28 = vld [vmem:[%s1028_s17] ss:$12 sps:$4 sm:$0xff]  }
  0x1d   : > { %865 = vmatprep.mubr.bf16.mxu1 %v233_v16  ;;  %v950_v29 = vld [vmem:[%s1028_s17 + $0x38] ss:$12 sps:$4 sm:$0xff]   ;;  %v951_v30 = vld [vmem:[%s1028_s17 + $0x20] ss:$12 sps:$4 sm:$0xff]   ;;  %v1092_v31 = vld [vmem:[%s1141_s2 + $0x10] sm:$0xff] }
  0x1e   : > { %852 = vmatpush3.bf16.msra.mxu1 %v946_v18  ;;  %v1097_v32 = vld [vmem:[%s1141_s2 + $0x18] sm:$0xff]  ;;  %v952_v34 = vld [vmem:[%s1028_s17 + $0x8] ss:$12 sps:$4 sm:$0xff]  }
  0x1f   : > { %368 = vmatpush1.bf16.msra.mxu0 %v929_v10  ;;  %853 = vmatprep.subr.bf16.mxu1 %v947_v21  ;;  %v234_v33 = vpack.c.bf16 %v1097_v32, %v1092_v31 }
  0x20   : > { %369 = vmatprep.subr.bf16.mxu0 %v930_v11 }
  0x22   : > { %854 = vmatpush3.bf16.msra.mxu1 %v947_v21 }
  0x23   : > { %370 = vmatpush1.bf16.msra.mxu0 %v932_v13  ;;  %855 = vmatprep.subr.bf16.mxu1 %v948_v24 }
  0x24   : > { %371 = vmatprep.subr.bf16.mxu0 %v933_v14 }
  0x26   : > { %856 = vmatpush3.bf16.msra.mxu1 %v948_v24 }
  0x27   : > { %372 = vmatpush1.bf16.msra.mxu0 %v935_v19  ;;  %857 = vmatprep.subr.bf16.mxu1 %v949_v27 }
  0x28   : > { %373 = vmatprep.subr.bf16.mxu0 %v936_v20 }
  0x2a   : > { %858 = vmatpush3.bf16.msra.mxu1 %v949_v27 }
  0x2b   : > { %374 = vmatpush1.bf16.msra.mxu0 %v938_v22  ;;  %859 = vmatprep.subr.bf16.mxu1 %v950_v29 }
  0x2c   : > { %375 = vmatprep.subr.bf16.mxu0 %v939_v23 }
  0x2e   : > { %860 = vmatpush3.bf16.msra.mxu1 %v950_v29 }
  0x2f   : > { %376 = vmatpush1.bf16.msra.mxu0 %v941_v25  ;;  %861 = vmatprep.subr.bf16.mxu1 %v951_v30 }
  0x30   : > { %377 = vmatprep.subr.bf16.mxu0 %v942_v26 }
  0x32   : > { %862 = vmatpush3.bf16.msra.mxu1 %v951_v30 }
  0x33   : > { %378 = vmatpush1.bf16.msra.mxu0 %v944_v28  ;;  %863 = vmatprep.subr.bf16.mxu1 %v952_v34 }
  0x34   : > { %875 = vmatprep.subr.bf16.mxu0 %v990_v35 }
  0x36   : > { %396 = vmatmul.mubr.bf16.vlgmr.msra.gmra.mxu0 %v233_v16  ;;  %864 = vmatpush3.bf16.msra.mxu1 %v952_v34 }
  0x37   : > { %405 = vmatprep.mubr.bf16.mxu0 %v989_v6  ;;  %869 = vmatprep.subr.bf16.mxu1 %v990_v35 }
  0x39   : > { %866 = vmatmul.mubr.bf16.vlgmr.msra.gmra.mxu1 %v234_v33 }
  0x3a   : > { %871 = vmatprep.mubr.msk.bf16.mxu1 %vm991_vm0, %v990_v35 }
  0x3e   : > { %406 = vmatmul.mubr.bf16.gmra.mxu0 %v234_v33 }
  0x3f   : > { %877 = vmatprep.mubr.msk.bf16.mxu0 %vm991_vm0, %v990_v35 }
  0xf6   : > { %v397_v36 = vpop.f32.mrf.mxu0 }
  0xf8   : > { %v399_v37 = vpop.f32.mrf.mxu0 }
  0xf9   : > { %v867_v48 = vpop.f32.mrf.mxu1 }
  0xfa   : > { %v401_v38 = vpop.f32.mrf.mxu0 }
  0xfb   : > { %v465_v39 = vpack.c.bf16 %v401_v38, %v397_v36  ;;  %v450_v49 = vpop.f32.mrf.mxu1 }
  0xfc   : > { %v403_v40 = vpop.f32.mrf.mxu0 }
  0xfd   : > { %870 = vmatpush3.bf16.xpose.msra.mxu1 %v465_v39  ;;  %v467_v43 = vpack.c.bf16 %v403_v40, %v399_v37  ;;  %v868_v50 = vpop.f32.mrf.mxu1 }
  0xfe   : > { %v407_v41 = vpop.f32.mrf.mxu0  ;;  %881 = vmatprep.subr.bf16.mxu1 %v990_v35  ;;  %v470_v51 = vpack.c.bf16 %v868_v50, %v867_v48 }
  0xff   : > { %v453_v52 = vpop.f32.mrf.mxu1 }
 0x100   : > { %v409_v42 = vpop.f32.mrf.mxu0  ;;  %v469_v53 = vpack.c.bf16 %v453_v52, %v450_v49 }
 0x102   : > { %v411_v44 = vpop.f32.mrf.mxu0 }
 0x103   : > { %v466_v45 = vpack.c.bf16 %v411_v44, %v407_v41 }
 0x104   : > { %872 = vmatmul.mubr.bf16.vlgmr.msra.gmra.mxu1 %v467_v43  ;;  %v413_v46 = vpop.f32.mrf.mxu0 }
 0x105   : > { %876 = vmatpush3.bf16.xpose.msra.mxu0 %v466_v45  ;;  %883 = vmatprep.mubr.msk.bf16.mxu1 %vm991_vm0, %v990_v35  ;;  %v468_v47 = vpack.c.bf16 %v413_v46, %v409_v42 }
 0x106   : > { %887 = vmatprep.subr.bf16.mxu0 %v990_v35  ;;  %882 = vmatpush3.bf16.msra.mxu1 %v469_v53 }
 0x10c   : > { %878 = vmatmul.mubr.bf16.vlgmr.msra.gmra.mxu0 %v468_v47 }
 0x10d   : > { %889 = vmatprep.mubr.msk.bf16.mxu0 %vm991_vm0, %v990_v35  ;;  %888 = vmatpush3.bf16.msra.mxu0 %v470_v51 }
 0x1c4   : > { %v505_v54 = vpop.f32.mrf.mxu1 }
 0x1c5   : > { %v563_v55 = vsel %vm562_vm1, %v505_v54, -inf }
 0x1c6   : > { %v566_v56 = vrot.slane %v563_v55, 4  ;;  %v873_v57 = vpop.f32.mrf.mxu1 }
 0x1c8   : > { %v567_v58 = vmax.f32 %v563_v55, %v566_v56  ;;  %v508_v59 = vpop.f32.mrf.mxu1 }
 0x1ca   : > { %v568_v60 = vrot.slane %v567_v58, 2  ;;  %v874_v61 = vpop.f32.mrf.mxu1 }
 0x1cc   : > { %v569_v62 = vmax.f32 %v567_v58, %v568_v60  ;;  %v546_v63 = vpop.f32.mrf.mxu0 }
 0x1cd   : > { %v572_v0 = vsel %vm562_vm1, %v546_v63, -inf }
 0x1ce   : > { %v570_v1 = vrot.slane %v569_v62, 1  ;;  %v575_v2 = vrot.slane %v572_v0, 4  ;;  %v879_v3 = vpop.f32.mrf.mxu0 }
 0x1d0   : > { %v571_v4 = vmax.f32 %v569_v62, %v570_v1  ;;  %v576_v5 = vmax.f32 %v572_v0, %v575_v2  ;;  %v549_v6 = vpop.f32.mrf.mxu0 }
 0x1d2   : > { %v581_v7 = vsub.f32 %v505_v54, %v571_v4  ;;  %v582_v8 = vsub.f32 -inf, %v571_v4  ;;  %v577_v9 = vrot.slane %v576_v5, 2  ;;  %v880_v10 = vpop.f32.mrf.mxu0 }
 0x1d4   : > { %v585_v11 = vmul.f32 1.442695, %v581_v7  ;;  %v587_v13 = vmul.f32 1.442695, %v582_v8  ;;  %v578_v14 = vmax.f32 %v576_v5, %v577_v9 }
 0x1d6   : > { %953 = vpow2.f32 %v585_v11  ;;  %v579_v16 = vrot.slane %v578_v14, 1 }
 0x1d7   : > { %955 = vpow2.f32 %v587_v13 }
 0x1d8   : > { %v580_v17 = vmax.f32 %v578_v14, %v579_v16 }
 0x1da   : > { %v583_v18 = vsub.f32 %v546_v63, %v580_v17  ;;  %v584_v19 = vsub.f32 -inf, %v580_v17 }
 0x1dc   : > { %v589_v20 = vmul.f32 1.442695, %v583_v18  ;;  %v591_v21 = vmul.f32 1.442695, %v584_v19 }
 0x1de   : > { %957 = vpow2.f32 %v589_v20 }
 0x1df   : > { %959 = vpow2.f32 %v591_v21 }
 0x1e3   : > { %v954_v22 = vpop.eup %953 }
 0x1e4   : > { %v956_v23 = vpop.eup %955  ;;  %v593_v24 = vsel %vm562_vm1, %v954_v22, 0.0 }
 0x1e5   : > { %v594_v25 = vsel %vm562_vm1, %v956_v23, 0.0 }
 0x1e6   : > { %v595_v26 = vadd.f32 %v594_v25, %v593_v24 }
 0x1e8   : > { %v596_v27 = vrot.slane %v595_v26, 4 }
 0x1ea   : > { %v597_v28 = vadd.f32 %v596_v27, %v595_v26 }
 0x1eb   : > { %v958_v29 = vpop.eup %957 }
 0x1ec   : > { %v960_v30 = vpop.eup %959  ;;  %v598_v33 = vrot.slane %v597_v28, 2  ;;  %v602_v34 = vsel %vm562_vm1, %v958_v29, 0.0 }
 0x1ed   : > { %v603_v35 = vsel %vm562_vm1, %v960_v30, 0.0 }
 0x1ee   : > { %v599_v36 = vadd.f32 %v598_v33, %v597_v28  ;;  %v604_v37 = vadd.f32 %v603_v35, %v602_v34 }
 0x1f0   : > { %v600_v38 = vrot.slane %v599_v36, 1  ;;  %v605_v39 = vrot.slane %v604_v37, 4 }
 0x1f2   : > { %v601_v40 = vadd.f32 %v600_v38, %v599_v36  ;;  %v606_v41 = vadd.f32 %v605_v39, %v604_v37 }
 0x1f4   : > { %961 = vrcp.f32 %v601_v40  ;;  %v607_v42 = vrot.slane %v606_v41, 2 }
 0x1f6   : > { %v608_v43 = vadd.f32 %v607_v42, %v606_v41 }
 0x1f8   : > { %v609_v44 = vrot.slane %v608_v43, 1 }
 0x1fa   : > { %v610_v45 = vadd.f32 %v609_v44, %v608_v43 }
 0x1fc   : > { %963 = vrcp.f32 %v610_v45 }
 0x201   : > { %v962_v46 = vpop.eup %961 }
 0x202   : > { %v613_v47 = vmul.f32 %v962_v46, %v954_v22  ;;  %v614_v48 = vmul.f32 %v962_v46, %v956_v23 }
 0x204   : > { %v617_v49 = vpack.c.bf16 %v614_v48, %v613_v47 }
 0x206   : > { %884 = vmatmul.mubr.msk.bf16.vlgmr.msra.gmra.mxu1 %vm562_vm1, %v617_v49 }
 0x209   : > { %v964_v50 = vpop.eup %963 }
 0x20a   : > { %v615_v51 = vmul.f32 %v964_v50, %v958_v29  ;;  %v616_v52 = vmul.f32 %v964_v50, %v960_v30 }
 0x20c   : > { %v618_v53 = vpack.c.bf16 %v616_v52, %v615_v51 }
 0x20e   : > { %890 = vmatmul.mubr.msk.bf16.vlgmr.msra.gmra.mxu0 %vm562_vm1, %v618_v53 }
 0x2c6   : > { %v656_v54 = vpop.f32.mrf.mxu1 }
 0x2c7   : > { %v707_v55 = vadd.f32 %v656_v54, %v1064_v12 }
 0x2c8   : > { %v885_v56 = vpop.f32.mrf.mxu1 }
 0x2c9   : > { %711 = vst [vmem:[%s1141_s2] sm:$0xff] %v707_v55 }
 0x2ca   : > { %v659_v57 = vpop.f32.mrf.mxu1 }
 0x2cb   : > { %v708_v58 = vadd.f32 %v659_v57, %v1071_v15 }
 0x2cc   : > { %v886_v59 = vpop.f32.mrf.mxu1 }
 0x2cd   : > { %712 = vst [vmem:[%s1141_s2 + $0x8] sm:$0xff] %v708_v58 }
 0x2ce   : > { %v700_v60 = vpop.f32.mrf.mxu0 }
 0x2cf   : > { %v709_v61 = vadd.f32 %v700_v60, %v1092_v31 }
 0x2d0   : > { %v891_v62 = vpop.f32.mrf.mxu0 }
 0x2d1   : > { %713 = vst [vmem:[%s1141_s2 + $0x10] sm:$0xff] %v709_v61 }
 0x2d2   : > { %v703_v12 = vpop.f32.mrf.mxu0 }
 0x2d3   : > { %v710_v63 = vadd.f32 %v703_v12, %v1097_v32 }
 0x2d4   : > { %v892_v0 = vpop.f32.mrf.mxu0 }
 0x2d5   : > { %714 = vst [vmem:[%s1141_s2 + $0x18] sm:$0xff] %v710_v63 }
 0x2d6 PF: > { %s12_s11 = sadd.s32 1, %s987_s11   ;;  %s1142_s9 = smov %s983_s10 }
 0x2d7   : > { %p9_p6 = scmp.ge.s32.totalorder %s12_s11, 4   ;;  %s1143_s10 = smov %s1145_s12 }
 0x2d9   :  { %11 = sbr.rel (!%p9_p6) target bundleno = 2 (0x2), region = 65 }

</bundles_post_ra>
